<compile_context>
chip_gen: v6e
topology: v6e:2x2x1
jax: 0.10.0
libtpu: 0.0.40
codegen_flags: <defaults>
</compile_context>

<pallas_src>
import functools

import jax
import jax.numpy as jnp
from jax import lax
from jax.experimental import pallas as pl
from jax.experimental.pallas import tpu as pltpu


def _attn_kernel(v_ref, q_ref, wvbd_ref, bvt_ref, wq_ref, bq_ref, wl_ref, red_ref,
                 out_ref, *, chunk):
    # v_ref  : (TB, k*v_dim)   lane-dense repacked v rows for this batch tile
    # q_ref  : (TB, q_dim)
    # wvbd_ref: (k*v_dim, k*H) block-diagonal Wv (k copies of Wv on the diagonal)
    # bvt_ref : (1, k*H)       bv tiled k times
    # wq_ref : (q_dim, H), bq_ref: (1, H)
    # wl_ref : (1, H)          effective (weight-normed) Linear(H, 1) weight, as a row
    # red_ref: (k*H, k)        0/1 per-group H-reduction matrix
    # out_ref: (TB, k)         softmax attention weights
    tb, k = out_ref.shape
    num_chunks = tb // chunk

    def body(c, carry):
        r0 = pl.multiple_of(c * chunk, chunk)
        vb = v_ref[pl.ds(r0, chunk), :]                       # [CB, k*v_dim]
        qb = q_ref[pl.ds(r0, chunk), :]                       # [CB, q_dim]

        # v projection for all k positions at once: one lane-dense MXU matmul.
        vp = jnp.dot(vb, wvbd_ref[...], preferred_element_type=jnp.float32)
        vp = jnp.maximum(vp + bvt_ref[...], 0.0)              # [CB, k*H]

        # q projection with the final linear's weight folded in:
        #   logits[b, g] = sum_h vp[b, g*H + h] * (q_proj[b, h] * wl[h])  (+ bl,
        #   dropped: constant over k, cancels under softmax(dim=1)).
        qp = jnp.dot(qb, wq_ref[...], preferred_element_type=jnp.float32)
        qp = jnp.maximum(qp + bq_ref[...], 0.0)               # [CB, H]
        s = qp * wl_ref[...]                                  # [CB, H]
        s_cat = jnp.concatenate([s] * k, axis=-1)             # [CB, k*H]

        # TODO(synk): nn.Dropout(0.2) on joint_repr is identity here (inference
        # semantics); training-mode dropout would need pltpu.prng_seed/stateful_bernoulli.

        # Per-group reduction over H via a 0/1 MXU matmul (stays lane-dense).
        logits = jnp.dot(vp * s_cat, red_ref[...],
                         preferred_element_type=jnp.float32)  # [CB, k]

        # Softmax over k with an exact divide so rows sum to 1 to f32 precision.
        m = jnp.max(logits, axis=-1, keepdims=True)
        e = jnp.exp(logits - m)
        d = jnp.sum(e, axis=-1, keepdims=True)
        out_ref[pl.ds(r0, chunk), :] = (e / d).astype(out_ref.dtype)
        return carry

    unroll = num_chunks if num_chunks <= 8 else 8
    lax.fori_loop(0, num_chunks, body, 0, unroll=unroll)


def _round_up(x, m):
    return ((x + m - 1) // m) * m


def new_attention(v, q, params, *, block_batch=2048, chunk=64):
    """v: [B, k, v_dim] f32, q: [B, q_dim] f32 -> attention weights [B, k, 1] f32."""
    wv, bv, wq, bq, wl = (params[n] for n in ("wv", "bv", "wq", "bq", "wl"))
    # NOTE: params["bl"] is intentionally unused: a bias on the scalar logit is
    # uniform over k and cancels exactly under softmax(dim=1).
    B, k, v_dim = v.shape
    q_dim = q.shape[1]
    H = wv.shape[1]

    cb = int(chunk)
    assert cb % 8 == 0, "chunk must be a multiple of 8 (sublane alignment)"
    tb = min(_round_up(int(block_batch), cb), _round_up(B, cb))
    num_tiles = -(-B // tb)
    # v7x has 2 TensorCores: make sure the ("parallel",) grid axis has >= 2 steps
    # whenever the batch is big enough to split.
    if num_tiles == 1 and tb >= 2 * cb:
        tb = _round_up(-(-B // 2), cb)
        num_tiles = -(-B // tb)
    b_pad = num_tiles * tb

    if b_pad != B:
        v = jnp.pad(v, ((0, b_pad - B), (0, 0), (0, 0)))
        q = jnp.pad(q, ((0, b_pad - B), (0, 0)))

    # Lane-dense repack: one row per batch element with k*v_dim on the lane axis,
    # plus a block-diagonal Wv so the v projection is a single full-width matmul.
    v_packed = v.reshape(b_pad, k * v_dim)                     # contiguous reshape
    eye_k = jnp.eye(k, dtype=wv.dtype)
    wv_bd = jnp.kron(eye_k, wv)                                # [k*v_dim, k*H]
    bv_t = jnp.tile(bv.reshape(1, H), (1, k))                  # [1, k*H]
    red = jnp.kron(eye_k, jnp.ones((H, 1), wv.dtype))          # [k*H, k]
    wl_row = wl.reshape(1, H)
    bq_row = bq.reshape(1, H)

    kernel = functools.partial(_attn_kernel, chunk=cb)
    out_bk = pl.pallas_call(
        kernel,
        out_shape=jax.ShapeDtypeStruct((b_pad, k), jnp.float32),
        grid_spec=pltpu.PrefetchScalarGridSpec(
            num_scalar_prefetch=0,
            grid=(num_tiles,),
            in_specs=[
                pl.BlockSpec((tb, k * v_dim), lambda t: (t, 0)),     # packed v
                pl.BlockSpec((tb, q_dim), lambda t: (t, 0)),         # q
                pl.BlockSpec((k * v_dim, k * H), lambda t: (0, 0)),  # block-diag Wv
                pl.BlockSpec((1, k * H), lambda t: (0, 0)),          # tiled bv
                pl.BlockSpec((q_dim, H), lambda t: (0, 0)),          # Wq
                pl.BlockSpec((1, H), lambda t: (0, 0)),              # bq
                pl.BlockSpec((1, H), lambda t: (0, 0)),              # wl row
                pl.BlockSpec((k * H, k), lambda t: (0, 0)),          # reduction matrix
            ],
            out_specs=pl.BlockSpec((tb, k), lambda t: (t, 0)),       # [b_pad, k]
        ),
        compiler_params=pltpu.CompilerParams(
            dimension_semantics=("parallel",),     # shard batch tiles over v7x's 2 TCs
            vmem_limit_bytes=32 * 1024 * 1024,
        ),
    )(v_packed, q, wv_bd, bv_t, wq, bq_row, wl_row, red)

    # Layout plumbing back to the PyTorch output shape [B, k, 1] (slice only; no
    # transpose / extra HBM pass).
    return out_bk[:B, :, None]


def init_params(key, v_dim, q_dim, num_hid):
    ks = jax.random.split(key, 6)
    scale = 0.1
    return {
        "wv": scale * jax.random.normal(ks[0], (v_dim, num_hid), jnp.float32),
        "bv": scale * jax.random.normal(ks[1], (1, num_hid), jnp.float32),
        "wq": scale * jax.random.normal(ks[2], (q_dim, num_hid), jnp.float32),
        "bq": scale * jax.random.normal(ks[3], (1, num_hid), jnp.float32),
        "wl": scale * jax.random.normal(ks[4], (num_hid, 1), jnp.float32),
        "bl": scale * jax.random.normal(ks[5], (1, 1), jnp.float32),
    }


def reference(v, q, p):
    v_proj = jnp.maximum(jnp.einsum("bkd,dh->bkh", v, p["wv"]) + p["bv"], 0.0)
    q_proj = jnp.maximum(q @ p["wq"] + p["bq"], 0.0)[:, None, :]
    joint = v_proj * q_proj
    logits = jnp.einsum("bkh,ho->bko", joint, p["wl"]) + p["bl"]
    return jax.nn.softmax(logits, axis=1)


if __name__ == "__main__":
    K, V_DIM, Q_DIM, NUM_HID = 8, 16, 32, 32
    key = jax.random.PRNGKey(0)
    kv, kq, kp = jax.random.split(key, 3)
    params = init_params(kp, V_DIM, Q_DIM, NUM_HID)

    # Small case: single tile, single chunk (padded internally to 64 rows).
    B = 4
    v = jax.random.normal(kv, (B, K, V_DIM), jnp.float32)
    q = jax.random.normal(kq, (B, Q_DIM), jnp.float32)
    out = jax.block_until_ready(new_attention(v, q, params))
    ref = reference(v, q, params)
    assert out.shape == (B, K, 1), out.shape
    assert jnp.allclose(out, ref, atol=2e-3, rtol=1e-3), float(jnp.max(jnp.abs(out - ref)))
    assert jnp.allclose(out.sum(axis=1), 1.0, atol=1e-3)

    # Multi-tile case with a non-divisible batch and an explicit small tile
    # (exercises padding, 3 grid steps, 2 chunks per tile).
    B2 = 300
    kv2, kq2 = jax.random.split(jax.random.PRNGKey(1), 2)
    v2 = jax.random.normal(kv2, (B2, K, V_DIM), jnp.float32)
    q2 = jax.random.normal(kq2, (B2, Q_DIM), jnp.float32)
    out2 = jax.block_until_ready(new_attention(v2, q2, params, block_batch=128))
    ref2 = reference(v2, q2, params)
    assert out2.shape == (B2, K, 1), out2.shape
    assert jnp.allclose(out2, ref2, atol=2e-3, rtol=1e-3), float(jnp.max(jnp.abs(out2 - ref2)))
    assert jnp.allclose(out2.sum(axis=1), 1.0, atol=1e-3)

    # Default configuration path (tile auto-split into 2 grid steps for megacore,
    # multiple chunks per tile via the inner fori_loop).
    out3 = jax.block_until_ready(new_attention(v2, q2, params))
    assert out3.shape == (B2, K, 1), out3.shape
    assert jnp.allclose(out3, ref2, atol=2e-3, rtol=1e-3), float(jnp.max(jnp.abs(out3 - ref2)))
    assert jnp.allclose(out3.sum(axis=1), 1.0, atol=1e-3)

    print("KERNEL_OK")
</pallas_src>

<mosaic_0001>
module attributes {stable_mosaic.version = 11 : i64} {
  func.func @_attn_kernel(%arg0: i32, %arg1: memref<64x128xf32, #tpu.memory_space<vmem>>, %arg2: memref<64x32xf32, #tpu.memory_space<vmem>>, %arg3: memref<128x256xf32, #tpu.memory_space<vmem>>, %arg4: memref<1x256xf32, #tpu.memory_space<vmem>>, %arg5: memref<32x32xf32, #tpu.memory_space<vmem>>, %arg6: memref<1x32xf32, #tpu.memory_space<vmem>>, %arg7: memref<1x32xf32, #tpu.memory_space<vmem>>, %arg8: memref<256x8xf32, #tpu.memory_space<vmem>>, %arg9: memref<64x8xf32, #tpu.memory_space<vmem>>) attributes {dimension_semantics = [#tpu.dimension_semantics<parallel>], iteration_bounds = array<i64: 1>, scalar_prefetch = 0 : i64, scratch_operands = 0 : i64, tpu.core_type = #tpu.core_type<tc>, window_params = [{transform_indices = @transform_0, window_bounds = array<i64: 64, 128>}, {transform_indices = @transform_1, window_bounds = array<i64: 64, 32>}, {pipeline_mode = #tpu.pipeline_mode<synchronous>, transform_indices = @transform_2, window_bounds = array<i64: 128, 256>}, {pipeline_mode = #tpu.pipeline_mode<synchronous>, transform_indices = @transform_3, window_bounds = array<i64: 1, 256>}, {pipeline_mode = #tpu.pipeline_mode<synchronous>, transform_indices = @transform_4, window_bounds = array<i64: 32, 32>}, {pipeline_mode = #tpu.pipeline_mode<synchronous>, transform_indices = @transform_5, window_bounds = array<i64: 1, 32>}, {pipeline_mode = #tpu.pipeline_mode<synchronous>, transform_indices = @transform_6, window_bounds = array<i64: 1, 32>}, {pipeline_mode = #tpu.pipeline_mode<synchronous>, transform_indices = @transform_7, window_bounds = array<i64: 256, 8>}, {transform_indices = @transform_8, window_bounds = array<i64: 64, 8>}]} {
    %c0_i32 = arith.constant 0 : i32
    %c64_i32 = arith.constant 64 : i32
    %0 = arith.muli %c0_i32, %c64_i32 : i32
    %1 = tpu.assume_multiple %0, 64 : i32
    %2 = arith.index_cast %1 : i32 to index
    %c0 = arith.constant 0 : index
    %3 = vector.load %arg1[%2, %c0] : memref<64x128xf32, #tpu.memory_space<vmem>>, vector<64x128xf32>
    %4 = arith.index_cast %1 : i32 to index
    %c0_0 = arith.constant 0 : index
    %5 = vector.load %arg2[%4, %c0_0] : memref<64x32xf32, #tpu.memory_space<vmem>>, vector<64x32xf32>
    %c0_1 = arith.constant 0 : index
    %c0_2 = arith.constant 0 : index
    %6 = vector.load %arg3[%c0_1, %c0_2] : memref<128x256xf32, #tpu.memory_space<vmem>>, vector<128x256xf32>
    %cst = arith.constant dense<0.000000e+00> : vector<64x256xf32>
    %7 = tpu.matmul %3, %6, %cst {dimension_numbers = #tpu.dot_dimension_numbers<[1], [0], [0], [1], [0, 0, 1, 1], [], []>} : vector<64x128xf32>, vector<128x256xf32>, vector<64x256xf32> -> vector<64x256xf32>
    %c0_3 = arith.constant 0 : index
    %c0_4 = arith.constant 0 : index
    %8 = vector.load %arg4[%c0_3, %c0_4] : memref<1x256xf32, #tpu.memory_space<vmem>>, vector<1x256xf32>
    %9 = vector.broadcast %8 : vector<1x256xf32> to vector<64x256xf32>
    %10 = arith.addf %7, %9 : vector<64x256xf32>
    %cst_5 = arith.constant 0.000000e+00 : f32
    %11 = vector.broadcast %cst_5 : f32 to vector<64x256xf32>
    %12 = arith.maximumf %10, %11 : vector<64x256xf32>
    %c0_6 = arith.constant 0 : index
    %c0_7 = arith.constant 0 : index
    %13 = vector.load %arg5[%c0_6, %c0_7] : memref<32x32xf32, #tpu.memory_space<vmem>>, vector<32x32xf32>
    %cst_8 = arith.constant dense<0.000000e+00> : vector<64x32xf32>
    %14 = tpu.matmul %5, %13, %cst_8 {dimension_numbers = #tpu.dot_dimension_numbers<[1], [0], [0], [1], [0, 0, 1, 1], [], []>} : vector<64x32xf32>, vector<32x32xf32>, vector<64x32xf32> -> vector<64x32xf32>
    %c0_9 = arith.constant 0 : index
    %c0_10 = arith.constant 0 : index
    %15 = vector.load %arg6[%c0_9, %c0_10] : memref<1x32xf32, #tpu.memory_space<vmem>>, vector<1x32xf32>
    %16 = vector.broadcast %15 : vector<1x32xf32> to vector<64x32xf32>
    %17 = arith.addf %14, %16 : vector<64x32xf32>
    %cst_11 = arith.constant 0.000000e+00 : f32
    %18 = vector.broadcast %cst_11 : f32 to vector<64x32xf32>
    %19 = arith.maximumf %17, %18 : vector<64x32xf32>
    %c0_12 = arith.constant 0 : index
    %c0_13 = arith.constant 0 : index
    %20 = vector.load %arg7[%c0_12, %c0_13] : memref<1x32xf32, #tpu.memory_space<vmem>>, vector<1x32xf32>
    %21 = vector.broadcast %20 : vector<1x32xf32> to vector<64x32xf32>
    %22 = arith.mulf %19, %21 : vector<64x32xf32>
    %23 = tpu.concatenate %22, %22, %22, %22, %22, %22, %22, %22 in 1 : vector<64x32xf32>, vector<64x32xf32>, vector<64x32xf32>, vector<64x32xf32>, vector<64x32xf32>, vector<64x32xf32>, vector<64x32xf32>, vector<64x32xf32> -> vector<64x256xf32>
    %24 = arith.mulf %12, %23 : vector<64x256xf32>
    %c0_14 = arith.constant 0 : index
    %c0_15 = arith.constant 0 : index
    %25 = vector.load %arg8[%c0_14, %c0_15] : memref<256x8xf32, #tpu.memory_space<vmem>>, vector<256x8xf32>
    %cst_16 = arith.constant dense<0.000000e+00> : vector<64x8xf32>
    %26 = tpu.matmul %24, %25, %cst_16 {dimension_numbers = #tpu.dot_dimension_numbers<[1], [0], [0], [1], [0, 0, 1, 1], [], []>} : vector<64x256xf32>, vector<256x8xf32>, vector<64x8xf32> -> vector<64x8xf32>
    %cst_17 = arith.constant dense<0xFF800000> : vector<64xf32>
    %27 = vector.multi_reduction <maximumf>, %26, %cst_17 [1] : vector<64x8xf32> to vector<64xf32>
    %28 = vector.shape_cast %27 : vector<64xf32> to vector<64x1xf32>
    %29 = vector.broadcast %28 : vector<64x1xf32> to vector<64x8xf32>
    %30 = arith.subf %26, %29 : vector<64x8xf32>
    %31 = math.exp %30 : vector<64x8xf32>
    %cst_18 = arith.constant dense<0.000000e+00> : vector<64xf32>
    %32 = vector.multi_reduction <add>, %31, %cst_18 [1] : vector<64x8xf32> to vector<64xf32>
    %33 = vector.shape_cast %32 : vector<64xf32> to vector<64x1xf32>
    %34 = vector.broadcast %33 : vector<64x1xf32> to vector<64x8xf32>
    %35 = arith.divf %31, %34 : vector<64x8xf32>
    %36 = arith.index_cast %1 : i32 to index
    %c0_19 = arith.constant 0 : index
    %37 = vector.load %arg9[%36, %c0_19] : memref<64x8xf32, #tpu.memory_space<vmem>>, vector<64x8xf32>
    tpu.vector_store %arg9[%36, %c0_19], %35 {strides = array<i32>} : memref<64x8xf32, #tpu.memory_space<vmem>>, vector<64x8xf32>,
    %c1_i32 = arith.constant 1 : i32
    return
  }
  func.func @transform_0(%arg0: i32) -> (i32, i32) {
    %c0_i32 = arith.constant 0 : i32
    %c0_i32_0 = arith.constant 0 : i32
    return %arg0, %c0_i32 : i32, i32
  }
  func.func @transform_1(%arg0: i32) -> (i32, i32) {
    %c0_i32 = arith.constant 0 : i32
    %c0_i32_0 = arith.constant 0 : i32
    return %arg0, %c0_i32 : i32, i32
  }
  func.func @transform_2(%arg0: i32) -> (i32, i32) {
    %c0_i32 = arith.constant 0 : i32
    %c0_i32_0 = arith.constant 0 : i32
    %c0_i32_1 = arith.constant 0 : i32
    return %c0_i32, %c0_i32_0 : i32, i32
  }
  func.func @transform_3(%arg0: i32) -> (i32, i32) {
    %c0_i32 = arith.constant 0 : i32
    %c0_i32_0 = arith.constant 0 : i32
    %c0_i32_1 = arith.constant 0 : i32
    return %c0_i32, %c0_i32_0 : i32, i32
  }
  func.func @transform_4(%arg0: i32) -> (i32, i32) {
    %c0_i32 = arith.constant 0 : i32
    %c0_i32_0 = arith.constant 0 : i32
    %c0_i32_1 = arith.constant 0 : i32
    return %c0_i32, %c0_i32_0 : i32, i32
  }
  func.func @transform_5(%arg0: i32) -> (i32, i32) {
    %c0_i32 = arith.constant 0 : i32
    %c0_i32_0 = arith.constant 0 : i32
    %c0_i32_1 = arith.constant 0 : i32
    return %c0_i32, %c0_i32_0 : i32, i32
  }
  func.func @transform_6(%arg0: i32) -> (i32, i32) {
    %c0_i32 = arith.constant 0 : i32
    %c0_i32_0 = arith.constant 0 : i32
    %c0_i32_1 = arith.constant 0 : i32
    return %c0_i32, %c0_i32_0 : i32, i32
  }
  func.func @transform_7(%arg0: i32) -> (i32, i32) {
    %c0_i32 = arith.constant 0 : i32
    %c0_i32_0 = arith.constant 0 : i32
    %c0_i32_1 = arith.constant 0 : i32
    return %c0_i32, %c0_i32_0 : i32, i32
  }
  func.func @transform_8(%arg0: i32) -> (i32, i32) {
    %c0_i32 = arith.constant 0 : i32
    %c0_i32_0 = arith.constant 0 : i32
    return %arg0, %c0_i32 : i32, i32
  }
}

</mosaic_0001>

<bundles_post_ra>
// kernel: tpu_custom_call.1
= control target key start
LH: loop header
LB: loop body
LE: loop exit
PB: predicated region body
PF: predicated region fallthrough
CT: control target
= control target key end

     0   :  { %vm229_vm0 = vcmask 261120   ;;  %v908_v2 = vmov 0.0   ;;  %s909_s26 = smov 96   ;;  %vm470_vm1 = vcmask 523264   ;;  %vm479_vm2 = vcmask 785408   ;;  %s1404_s4 = inlined_call_operand.vmem [shape: f32[32,32], index: 4, kind: input, shape index: {}]   ;;  %s1405_s1 = inlined_call_operand.vmem [shape: f32[64,32], index: 1, kind: input, shape index: {}]   ;;  %s1406_s2 = inlined_call_operand.vmem [shape: f32[128,256], index: 2, kind: input, shape index: {}]   ;;  %s1407_s0 = inlined_call_operand.vmem [shape: f32[64,128], index: 0, kind: input, shape index: {}]   ;;  %s1408_s7 = inlined_call_operand.vmem [shape: f32[256,8], index: 7, kind: input, shape index: {}]   ;;  %s1409_s5 = inlined_call_operand.vmem [shape: f32[1,32], index: 5, kind: input, shape index: {}]   ;;  %s1410_s6 = inlined_call_operand.vmem [shape: f32[1,32], index: 6, kind: input, shape index: {}]   ;;  %s1411_s3 = inlined_call_operand.vmem [shape: f32[1,256], index: 3, kind: input, shape index: {}]   ;;  %s1412_s8 = inlined_call_operand.vmem [shape: f32[64,8], index: 8, kind: output, shape index: {}]  }
   0x1   :  { %v221_v0 = vld [vmem:[%s1404_s4 + $0x18] sm:$0xff]  ;;  %v220_v1 = vld [vmem:[%s1404_s4 + $0x10] sm:$0xff]  ;;  %153 = vmatprep.mubr.f32.mxu0 %v908_v2  ;;  %v37_v3 = vld [vmem:[%s1405_s1] sm:$0xff]  ;;  %vm641_vm3 = vcmask 64512  }
   0x2   :  { %820 = vmatprep.subr.mxu1 %v221_v0  ;;  %v219_v4 = vld [vmem:[%s1404_s4 + $0x8] sm:$0xff]  ;;  %828 = vmatprep.mubr.msk.f32.mxu1 %vm229_vm0, %v37_v3  ;;  %v218_v5 = vld [vmem:[%s1404_s4] sm:$0xff]  ;;  %v76_v6 = vld [vmem:[%s1406_s2 + $0xf8] sm:$0xff] }
   0x3   :  { %821 = vmatpush3.msra.mxu1 %v221_v0  ;;  %v75_v7 = vld [vmem:[%s1406_s2 + $0xf0] sm:$0xff]  ;;  %v74_v8 = vld [vmem:[%s1406_s2 + $0xe8] sm:$0xff]  ;;  %89 = vmatprep.subr.mxu0 %v76_v6  ;;  %v73_v9 = vld [vmem:[%s1406_s2 + $0xe0] sm:$0xff] }
   0x4   :  { %822 = vmatprep.subr.mxu1 %v220_v1  ;;  %v38_v10 = vld [vmem:[%s1405_s1 + $0x8] sm:$0xff]  ;;  %90 = vmatpush1.msra.mxu0 %v75_v7  ;;  %v72_v11 = vld [vmem:[%s1406_s2 + $0xd8] sm:$0xff]  ;;  %v39_v12 = vld [vmem:[%s1405_s1 + $0x10] sm:$0xff] }
   0x5   :  { %823 = vmatpush3.msra.mxu1 %v220_v1  ;;  %91 = vmatprep.subr.mxu0 %v74_v8  ;;  %v71_v13 = vld [vmem:[%s1406_s2 + $0xd0] sm:$0xff]  ;;  %v70_v14 = vld [vmem:[%s1406_s2 + $0xc8] sm:$0xff]  ;;  %v69_v15 = vld [vmem:[%s1406_s2 + $0xc0] sm:$0xff] }
   0x6   :  { %824 = vmatprep.subr.mxu1 %v219_v4  ;;  %92 = vmatpush1.msra.mxu0 %v73_v9  ;;  %v40_v16 = vld [vmem:[%s1405_s1 + $0x18] sm:$0xff]  ;;  %v41_v18 = vld [vmem:[%s1405_s1 + $0x20] sm:$0xff]  ;;  %v67_v19 = vld [vmem:[%s1406_s2 + $0xb0] sm:$0xff] }
   0x7   :  { %825 = vmatpush3.msra.mxu1 %v219_v4  ;;  %93 = vmatprep.subr.mxu0 %v72_v11  ;;  %v68_v17 = vld [vmem:[%s1406_s2 + $0xb8] sm:$0xff]  ;;  %v66_v20 = vld [vmem:[%s1406_s2 + $0xa8] sm:$0xff]  ;;  %v65_v21 = vld [vmem:[%s1406_s2 + $0xa0] sm:$0xff] }
   0x8   :  { %826 = vmatprep.subr.mxu1 %v218_v5  ;;  %94 = vmatpush1.msra.mxu0 %v71_v13  ;;  %v42_v22 = vld [vmem:[%s1405_s1 + $0x28] sm:$0xff]  ;;  %v64_v23 = vld [vmem:[%s1406_s2 + $0x98] sm:$0xff]  ;;  %v43_v24 = vld [vmem:[%s1405_s1 + $0x30] sm:$0xff] }
   0x9   :  { %827 = vmatpush3.msra.mxu1 %v218_v5  ;;  %95 = vmatprep.subr.mxu0 %v70_v14  ;;  %v63_v25 = vld [vmem:[%s1406_s2 + $0x90] sm:$0xff]  ;;  %v62_v26 = vld [vmem:[%s1406_s2 + $0x88] sm:$0xff]  ;;  %v61_v27 = vld [vmem:[%s1406_s2 + $0x80] sm:$0xff] }
   0xa   :  { %829 = vmatmul.mubr.msk.f32.vlgmr.msra.gmra.mxu1 %vm229_vm0, %v38_v10  ;;  %96 = vmatpush1.msra.mxu0 %v69_v15  ;;  %v44_v28 = vld [vmem:[%s1405_s1 + $0x38] sm:$0xff]  ;;  %v59_v30 = vld [vmem:[%s1406_s2 + $0x70] sm:$0xff]  ;;  %v58_v31 = vld [vmem:[%s1406_s2 + $0x68] sm:$0xff] }
   0xb   :  { %831 = vmatprep.mubr.msk.f32.mxu1 %vm229_vm0, %v39_v12  ;;  %97 = vmatprep.subr.mxu0 %v68_v17  ;;  %v60_v29 = vld [vmem:[%s1406_s2 + $0x78] sm:$0xff]  ;;  %v57_v32 = vld [vmem:[%s1406_s2 + $0x60] sm:$0xff]  ;;  %v55_v34 = vld [vmem:[%s1406_s2 + $0x50] sm:$0xff] }
   0xc   :  { %98 = vmatpush1.msra.mxu0 %v67_v19  ;;  %v56_v33 = vld [vmem:[%s1406_s2 + $0x58] sm:$0xff]  ;;  %v54_v35 = vld [vmem:[%s1406_s2 + $0x48] sm:$0xff]  ;;  %v53_v36 = vld [vmem:[%s1406_s2 + $0x40] sm:$0xff] }
   0xd   :  { %99 = vmatprep.subr.mxu0 %v66_v20  ;;  %v52_v37 = vld [vmem:[%s1406_s2 + $0x38] sm:$0xff]  ;;  %v51_v38 = vld [vmem:[%s1406_s2 + $0x30] sm:$0xff]  ;;  %v50_v39 = vld [vmem:[%s1406_s2 + $0x28] sm:$0xff] }
   0xe   :  { %832 = vmatmul.mubr.msk.f32.gmra.mxu1 %vm229_vm0, %v40_v16  ;;  %100 = vmatpush1.msra.mxu0 %v65_v21  ;;  %v49_v40 = vld [vmem:[%s1406_s2 + $0x20] sm:$0xff]  ;;  %v48_v41 = vld [vmem:[%s1406_s2 + $0x18] sm:$0xff]  ;;  %v47_v42 = vld [vmem:[%s1406_s2 + $0x10] sm:$0xff] }
   0xf   :  { %834 = vmatprep.mubr.msk.f32.mxu1 %vm229_vm0, %v41_v18  ;;  %101 = vmatprep.subr.mxu0 %v64_v23  ;;  %v46_v43 = vld [vmem:[%s1406_s2 + $0x8] sm:$0xff]  ;;  %v45_v44 = vld [vmem:[%s1406_s2] sm:$0xff]  ;;  %v31_v47 = vld [vmem:[%s1407_s0 + $0x10] sm:$0xff] }
  0x10   :  { %102 = vmatpush1.msra.mxu0 %v63_v25  ;;  %v29_v45 = vld [vmem:[%s1407_s0] sm:$0xff]  ;;  %v30_v46 = vld [vmem:[%s1407_s0 + $0x8] sm:$0xff]  ;;  %v32_v48 = vld [vmem:[%s1407_s0 + $0x18] sm:$0xff] }
  0x11   :  { %103 = vmatprep.subr.mxu0 %v62_v26  ;;  %v33_v49 = vld [vmem:[%s1407_s0 + $0x20] sm:$0xff]  ;;  %v34_v50 = vld [vmem:[%s1407_s0 + $0x28] sm:$0xff]  ;;  %v35_v51 = vld [vmem:[%s1407_s0 + $0x30] sm:$0xff] }
  0x12   :  { %835 = vmatmul.mubr.msk.f32.gmra.mxu1 %vm229_vm0, %v42_v22  ;;  %104 = vmatpush1.msra.mxu0 %v61_v27  ;;  %v36_v52 = vld [vmem:[%s1407_s0 + $0x38] sm:$0xff]  ;;  %v534_v55 = vld [vmem:[%s1408_s7 + $0xf0] sm:$0xff]  ;;  %v533_v57 = vld [vmem:[%s1408_s7 + $0xe8] sm:$0xff] }
  0x13   :  { %837 = vmatprep.mubr.msk.f32.mxu1 %vm229_vm0, %v43_v24  ;;  %105 = vmatprep.subr.mxu0 %v60_v29  ;;  %v535_v53 = vld [vmem:[%s1408_s7 + $0xf8] sm:$0xff]  ;;  %v518_v56 = vld [vmem:[%s1408_s7 + $0x70] sm:$0xff]  ;;  %v517_v58 = vld [vmem:[%s1408_s7 + $0x68] sm:$0xff] }
  0x14   :  { %106 = vmatpush1.msra.mxu0 %v59_v30  ;;  %v519_v54 = vld [vmem:[%s1408_s7 + $0x78] sm:$0xff]  ;;  %840 = vmatprep.subr.mxu1 %v535_v53  ;;  %v532_v59 = vld [vmem:[%s1408_s7 + $0xe0] sm:$0xff]  ;;  %v530_v63 = vld [vmem:[%s1408_s7 + $0xd0] sm:$0xff] }
  0x15   :  { %107 = vmatprep.subr.mxu0 %v58_v31  ;;  %856 = vmatpush3.msra.mxu1 %v519_v54  ;;  %v516_v60 = vld [vmem:[%s1408_s7 + $0x60] sm:$0xff]  ;;  %v531_v61 = vld [vmem:[%s1408_s7 + $0xd8] sm:$0xff]  ;;  %v514_v0 = vld [vmem:[%s1408_s7 + $0x50] sm:$0xff] }
  0x16   :  { %838 = vmatmul.mubr.msk.f32.gmra.mxu1 %vm229_vm0, %v44_v28  ;;  %108 = vmatpush1.msra.mxu0 %v57_v32  ;;  %v515_v62 = vld [vmem:[%s1408_s7 + $0x58] sm:$0xff]  ;;  %v529_v1 = vld [vmem:[%s1408_s7 + $0xc8] sm:$0xff]  ;;  %v528_v3 = vld [vmem:[%s1408_s7 + $0xc0] sm:$0xff] }
  0x17   :  { %109 = vmatprep.subr.mxu0 %v56_v33  ;;  %841 = vmatprep.subr.mxu1 %v534_v55  ;;  %v512_v4 = vld [vmem:[%s1408_s7 + $0x40] sm:$0xff]  ;;  %v527_v5 = vld [vmem:[%s1408_s7 + $0xb8] sm:$0xff]  ;;  %v526_v7 = vld [vmem:[%s1408_s7 + $0xb0] sm:$0xff] }
  0x18   :  { %110 = vmatpush1.msra.mxu0 %v55_v34  ;;  %857 = vmatpush3.msra.mxu1 %v518_v56  ;;  %v511_v6 = vld [vmem:[%s1408_s7 + $0x38] sm:$0xff]  ;;  %v510_v8 = vld [vmem:[%s1408_s7 + $0x30] sm:$0xff]  ;;  %v525_v9 = vld [vmem:[%s1408_s7 + $0xa8] sm:$0xff] }
  0x19   :  { %111 = vmatprep.subr.mxu0 %v54_v35  ;;  %842 = vmatprep.subr.mxu1 %v533_v57  ;;  %v509_v10 = vld [vmem:[%s1408_s7 + $0x28] sm:$0xff]  ;;  %v524_v11 = vld [vmem:[%s1408_s7 + $0xa0] sm:$0xff]  ;;  %v523_v13 = vld [vmem:[%s1408_s7 + $0x98] sm:$0xff] }
  0x1a   :  { %112 = vmatpush1.msra.mxu0 %v53_v36  ;;  %858 = vmatpush3.msra.mxu1 %v517_v58  ;;  %v508_v12 = vld [vmem:[%s1408_s7 + $0x20] sm:$0xff]  ;;  %v507_v14 = vld [vmem:[%s1408_s7 + $0x18] sm:$0xff]  ;;  %v522_v15 = vld [vmem:[%s1408_s7 + $0x90] sm:$0xff] }
  0x1b   :  { %113 = vmatprep.subr.mxu0 %v52_v37  ;;  %843 = vmatprep.subr.mxu1 %v532_v59  ;;  %v506_v16 = vld [vmem:[%s1408_s7 + $0x10] sm:$0xff]  ;;  %v742_v17 = vld [vmem:[%s1409_s5] ss:$0 sm:$0xff]  ;;  %v521_v18 = vld [vmem:[%s1408_s7 + $0x88] sm:$0xff] }
  0x1c   :  { %114 = vmatpush1.msra.mxu0 %v51_v38  ;;  %859 = vmatpush3.msra.mxu1 %v516_v60  ;;  %v505_v19 = vld [vmem:[%s1408_s7 + $0x8] sm:$0xff]  ;;  %v520_v21 = vld [vmem:[%s1408_s7 + $0x80] sm:$0xff] }
  0x1d   :  { %115 = vmatprep.subr.mxu0 %v50_v39  ;;  %844 = vmatprep.subr.mxu1 %v531_v61  ;;  %v504_v23 = vld [vmem:[%s1408_s7] sm:$0xff] }
  0x1e   :  { %116 = vmatpush1.msra.mxu0 %v49_v40  ;;  %860 = vmatpush3.msra.mxu1 %v515_v62  ;;  %v751_v24 = vld [vmem:[%s1410_s6] ss:$0 sm:$0xff]  ;;  %s911_s6 = smov 64  }
  0x1f   :  { %117 = vmatprep.subr.mxu0 %v48_v41  ;;  %845 = vmatprep.subr.mxu1 %v530_v63 }
  0x20   :  { %118 = vmatpush1.msra.mxu0 %v47_v42  ;;  %861 = vmatpush3.msra.mxu1 %v514_v0 }
  0x21   :  { %119 = vmatprep.subr.mxu0 %v46_v43  ;;  %846 = vmatprep.subr.mxu1 %v529_v1 }
  0x22   :  { %120 = vmatpush1.msra.mxu0 %v45_v44 }
  0x23   :  { %154 = vmatmul.mubr.f32.vlgmr.msra.gmra.mxu0 %v29_v45  ;;  %764 = vmatprep.subr.mxu0 %v535_v53 }
  0x24   :  { %159 = vmatprep.mubr.f32.mxu0 %v908_v2  ;;  %765 = vmatpush3.msra.mxu0 %v519_v54 }
  0x25   :  { %766 = vmatprep.subr.mxu0 %v534_v55 }
  0x26   :  { %767 = vmatpush3.msra.mxu0 %v518_v56  ;;  %v79_v56 = vlaneseq }
  0x27   :  { %160 = vmatmul.mubr.f32.gmra.mxu0 %v30_v46  ;;  %768 = vmatprep.subr.mxu0 %v533_v57 }
  0x28   :  { %165 = vmatprep.mubr.f32.mxu0 %v908_v2  ;;  %769 = vmatpush3.msra.mxu0 %v517_v58  ;;  %v80_v58 = vshrl.u32 %v79_v56, 7 }
  0x29   :  { %770 = vmatprep.subr.mxu0 %v532_v59 }
  0x2a   :  { %771 = vmatpush3.msra.mxu0 %v516_v60  ;;  %v81_v60 = vsub.s32 0, %v80_v58 }
  0x2b   :  { %166 = vmatmul.mubr.f32.gmra.mxu0 %v31_v47  ;;  %772 = vmatprep.subr.mxu0 %v531_v61  ;;  %v85_v61 = vsub.s32 1, %v80_v58 }
  0x2c   :  { %171 = vmatprep.mubr.f32.mxu0 %v908_v2  ;;  %773 = vmatpush3.msra.mxu0 %v515_v62 }
  0x2d   :  { %774 = vmatprep.subr.mxu0 %v530_v63  ;;  %v77_v63 = vld [vmem:[%s1411_s3] sm:$0x3] }
  0x2e   :  { %775 = vmatpush3.msra.mxu0 %v514_v0  ;;  %v1302_v0 = vrot.slane %v77_v63, %v81_v60 }
  0x2f   :  { %172 = vmatmul.mubr.f32.gmra.mxu0 %v32_v48  ;;  %776 = vmatprep.subr.mxu0 %v529_v1  ;;  %v1304_v1 = vrot.slane %v77_v63, %v85_v61 }
  0x30   :  { %177 = vmatprep.mubr.f32.mxu0 %v908_v2 }
  0x33   :  { %178 = vmatmul.mubr.f32.gmra.mxu0 %v33_v49 }
  0x34   :  { %183 = vmatprep.mubr.f32.mxu0 %v908_v2 }
  0x37   :  { %184 = vmatmul.mubr.f32.gmra.mxu0 %v34_v50 }
  0x38   :  { %189 = vmatprep.mubr.f32.mxu0 %v908_v2 }
  0x3b   :  { %190 = vmatmul.mubr.f32.gmra.mxu0 %v35_v51 }
  0x3c   :  { %195 = vmatprep.mubr.f32.mxu0 %v908_v2  ;;  %v513_v2 = vld [vmem:[%s1408_s7 + $0x48] sm:$0xff]  ;;  %s910_s7 = smov 32  }
  0x3d   :  { %862 = vmatpush3.msra.mxu1 %v513_v2  ;;  %777 = vmatpush3.msra.mxu0 %v513_v2 }
  0x3e   :  { %847 = vmatprep.subr.mxu1 %v528_v3  ;;  %778 = vmatprep.subr.mxu0 %v528_v3 }
  0x3f   :  { %196 = vmatmul.mubr.f32.gmra.mxu0 %v36_v52  ;;  %863 = vmatpush3.msra.mxu1 %v512_v4 }
  0x40   :  { %779 = vmatpush3.msra.mxu0 %v512_v4  ;;  %848 = vmatprep.subr.mxu1 %v527_v5 }
  0x41   :  { %780 = vmatprep.subr.mxu0 %v527_v5  ;;  %864 = vmatpush3.msra.mxu1 %v511_v6 }
  0x42   :  { %781 = vmatpush3.msra.mxu0 %v511_v6  ;;  %849 = vmatprep.subr.mxu1 %v526_v7 }
  0x43   :  { %782 = vmatprep.subr.mxu0 %v526_v7  ;;  %865 = vmatpush3.msra.mxu1 %v510_v8 }
  0x44   :  { %783 = vmatpush3.msra.mxu0 %v510_v8  ;;  %850 = vmatprep.subr.mxu1 %v525_v9 }
  0x45   :  { %784 = vmatprep.subr.mxu0 %v525_v9  ;;  %866 = vmatpush3.msra.mxu1 %v509_v10 }
  0x46   :  { %785 = vmatpush3.msra.mxu0 %v509_v10  ;;  %851 = vmatprep.subr.mxu1 %v524_v11 }
  0x47   :  { %786 = vmatprep.subr.mxu0 %v524_v11  ;;  %867 = vmatpush3.msra.mxu1 %v508_v12 }
  0x48   :  { %787 = vmatpush3.msra.mxu0 %v508_v12  ;;  %852 = vmatprep.subr.mxu1 %v523_v13 }
  0x49   :  { %788 = vmatprep.subr.mxu0 %v523_v13  ;;  %868 = vmatpush3.msra.mxu1 %v507_v14 }
  0x4a   :  { %789 = vmatpush3.msra.mxu0 %v507_v14  ;;  %853 = vmatprep.subr.mxu1 %v522_v15 }
  0x4b   :  { %790 = vmatprep.subr.mxu0 %v522_v15  ;;  %869 = vmatpush3.msra.mxu1 %v506_v16 }
  0x4c   :  { %791 = vmatpush3.msra.mxu0 %v506_v16  ;;  %854 = vmatprep.subr.mxu1 %v521_v18 }
  0x4d   :  { %792 = vmatprep.subr.mxu0 %v521_v18  ;;  %870 = vmatpush3.msra.mxu1 %v505_v19 }
  0x4e   :  { %793 = vmatpush3.msra.mxu0 %v505_v19  ;;  %855 = vmatprep.subr.mxu1 %v520_v21 }
  0x4f   :  { %794 = vmatprep.subr.mxu0 %v520_v21  ;;  %871 = vmatpush3.msra.mxu1 %v504_v23 }
  0x50   :  { %795 = vmatpush3.msra.mxu0 %v504_v23 }
  0xca   :  { %v830_v20 = vpop.f32.mrf.mxu1 }
  0xcb   :  { %v326_v22 = vadd.f32 %v830_v20, %v742_v17 }
  0xcc   :  { %v320_v25 = vpop.f32.mrf.mxu1 }
  0xcd   :  { %v360_v26 = vmax.f32 %v326_v22, 0.0  ;;  %v321_v49 = vadd.f32 %v742_v17, %v320_v25 }
  0xce   :  { %v833_v27 = vpop.f32.mrf.mxu1 }
  0xcf   :  { %v1231_v28 = vmul.f32 %v751_v24, %v360_v26  ;;  %v336_v29 = vadd.f32 %v833_v27, %v742_v17  ;;  %v359_v52 = vmax.f32 %v321_v49, 0.0 }
  0xd0   :  { %v330_v30 = vpop.f32.mrf.mxu1 }
  0xd1   :  { %v362_v31 = vmax.f32 %v336_v29, 0.0  ;;  %440 = vrot.lane.b32.xlu1 %v1231_v28, %s909_s26  ;;  %392 = vrot.lane.b32.xlu0 %v1231_v28, %s910_s7  ;;  %v331_v32 = vadd.f32 %v742_v17, %v330_v30  ;;  %v1277_v54 = vmul.f32 %v751_v24, %v359_v52 }
  0xd2   :  { %v836_v33 = vpop.f32.mrf.mxu1 }
  0xd3   :  { %v1237_v34 = vmul.f32 %v751_v24, %v362_v31  ;;  %v361_v35 = vmax.f32 %v331_v32, 0.0  ;;  %v346_v37 = vadd.f32 %v836_v33, %v742_v17 }
  0xd4   :  { %v340_v38 = vpop.f32.mrf.mxu1 }
  0xd5   :  { %v1239_v36 = vmul.f32 %v751_v24, %v361_v35  ;;  %416 = vrot.lane.b32.xlu0 %v1231_v28, %s911_s6  ;;  %420 = vrot.lane.b32.xlu1 %v1237_v34, %s911_s6  ;;  %v364_v39 = vmax.f32 %v346_v37, 0.0  ;;  %v341_v40 = vadd.f32 %v742_v17, %v340_v38 }
  0xd6   :  { %v839_v43 = vpop.f32.mrf.mxu1 }
  0xd7   :  { %v1249_v41 = vmul.f32 %v751_v24, %v364_v39  ;;  %v363_v42 = vmax.f32 %v341_v40, 0.0  ;;  %v356_v45 = vadd.f32 %v839_v43, %v742_v17 }
  0xd8   :  { %v350_v46 = vpop.f32.mrf.mxu1 }
  0xd9   :  { %396 = vrot.lane.b32.xlu0 %v1237_v34, %s910_s7  ;;  %394 = vrot.lane.b32.xlu1 %v1239_v36, %s910_s7  ;;  %v1255_v44 = vmul.f32 %v751_v24, %v363_v42  ;;  %v366_v47 = vmax.f32 %v356_v45, 0.0  ;;  %v351_v48 = vadd.f32 %v742_v17, %v350_v46 }
  0xdb   :  { %v1265_v50 = vmul.f32 %v751_v24, %v366_v47  ;;  %v365_v51 = vmax.f32 %v351_v48, 0.0 }
  0xdd   :  { %444 = vrot.lane.b32.xlu0 %v1237_v34, %s909_s26  ;;  %442 = vrot.lane.b32.xlu1 %v1239_v36, %s909_s26  ;;  %v1271_v53 = vmul.f32 %v751_v24, %v365_v51 }
  0xe1   :  { %418 = vrot.lane.b32.xlu0 %v1239_v36, %s911_s6  ;;  %424 = vrot.lane.b32.xlu1 %v1249_v41, %s911_s6 }
  0xe3   :  { %v1295_v55 = vpop.f32.mrf.mxu0 }
  0xe5   :  { %400 = vrot.lane.b32.xlu0 %v1249_v41, %s910_s7  ;;  %398 = vrot.lane.b32.xlu1 %v1255_v44, %s910_s7  ;;  %v1297_v57 = vpop.f32.mrf.mxu0 }
  0xe7   :  { %v161_v59 = vpop.f32.mrf.mxu0 }
  0xe8   :  { %v162_v3 = vadd.f32 %v161_v59, %v1302_v0 }
  0xe9   :  { %448 = vrot.lane.b32.xlu0 %v1249_v41, %s909_s26  ;;  %446 = vrot.lane.b32.xlu1 %v1255_v44, %s909_s26  ;;  %v163_v62 = vpop.f32.mrf.mxu0 }
  0xea   :  { %v164_v4 = vadd.f32 %v163_v62, %v1304_v1  ;;  %v204_v8 = vmax.f32 %v162_v3, 0.0 }
  0xeb   :  { %v167_v2 = vpop.f32.mrf.mxu0 }
  0xec   :  { %v205_v9 = vmax.f32 %v164_v4, 0.0  ;;  %v168_v22 = vadd.f32 %v167_v2, %v1302_v0 }
  0xed   :  { %422 = vrot.lane.b32.xlu0 %v1255_v44, %s911_s6  ;;  %404 = vrot.lane.b32.xlu1 %v1265_v50, %s910_s7  ;;  %v169_v5 = vpop.f32.mrf.mxu0 }
  0xee   :  { %v170_v23 = vadd.f32 %v169_v5, %v1304_v1  ;;  %v206_v29 = vmax.f32 %v168_v22, 0.0 }
  0xef   :  { %v173_v10 = vpop.f32.mrf.mxu0 }
  0xf0   :  { %v207_v30 = vmax.f32 %v170_v23, 0.0  ;;  %v174_v31 = vadd.f32 %v173_v10, %v1302_v0 }
  0xf1   :  { %402 = vrot.lane.b32.xlu1 %v1271_v53, %s910_s7  ;;  %390 = vrot.lane.b32.xlu0 %v1277_v54, %s910_s7  ;;  %v175_v17 = vpop.f32.mrf.mxu0 }
  0xf2   :  { %v176_v26 = vadd.f32 %v175_v17, %v1304_v1  ;;  %v208_v46 = vmax.f32 %v174_v31, 0.0 }
  0xf3   :  { %v179_v21 = vpop.f32.mrf.mxu0 }
  0xf4   :  { %v209_v37 = vmax.f32 %v176_v26, 0.0 }
  0xf5   :  { %428 = vrot.lane.b32.xlu1 %v1265_v50, %s911_s6  ;;  %426 = vrot.lane.b32.xlu0 %v1271_v53, %s911_s6  ;;  %v181_v27 = vpop.f32.mrf.mxu0 }
  0xf6   :  { %v182_v52 = vadd.f32 %v181_v27, %v1304_v1 }
  0xf7   :  { %v185_v40 = vpop.f32.mrf.mxu0 }
  0xf8   :  { %v211_v2 = vmax.f32 %v182_v52, 0.0  ;;  %v186_v4 = vadd.f32 %v185_v40, %v1302_v0 }
  0xf9   :  { %450 = vrot.lane.b32.xlu1 %v1271_v53, %s909_s26  ;;  %414 = vrot.lane.b32.xlu0 %v1277_v54, %s911_s6  ;;  %v187_v51 = vpop.f32.mrf.mxu0 }
  0xfa   :  { %v188_v61 = vadd.f32 %v187_v51, %v1304_v1 }
  0xfb   :  { %v191_v56 = vpop.f32.mrf.mxu0 }
  0xfd   :  { %452 = vrot.lane.b32.xlu1 %v1265_v50, %s909_s26  ;;  %438 = vrot.lane.b32.xlu0 %v1277_v54, %s909_s26  ;;  %v193_v3 = vpop.f32.mrf.mxu0 }
 0x143   :  { %v441_v6 = vpop.permute.xlu1 %440  ;;  %v393_v7 = vpop.permute.xlu0 %392 }
 0x144   :  { %v463_v11 = vsel %vm229_vm0, %v1231_v28, %v393_v7 }
 0x147   :  { %v417_v12 = vpop.permute.xlu0 %416  ;;  %v421_v13 = vpop.permute.xlu1 %420 }
 0x148   :  { %v472_v14 = vsel %vm470_vm1, %v463_v11, %v417_v12 }
 0x149   :  { %v481_v15 = vsel %vm479_vm2, %v472_v14, %v441_v6  ;;  %v197_v14 = vpop.f32.mrf.mxu0 }
 0x14a   :  { %v490_v16 = vmul.f32 %v481_v15, %v204_v8  ;;  %v491_v18 = vmul.f32 %v481_v15, %v205_v9  ;;  %v213_v8 = vmax.f32 %v188_v61, 0.0  ;;  %v212_v15 = vmax.f32 %v186_v4, 0.0 }
 0x14b   :  { %v397_v19 = vpop.permute.xlu0 %396  ;;  %v395_v20 = vpop.permute.xlu1 %394  ;;  %v198_v26 = vadd.f32 %v197_v14, %v1302_v0 }
 0x14c   :  { %605 = vmatprep.mubr.f32.mxu1 %v491_v18  ;;  %v465_v28 = vsel %vm229_vm0, %v1237_v34, %v397_v19  ;;  %v464_v32 = vsel %vm229_vm0, %v1239_v36, %v395_v20  ;;  %v180_v36 = vadd.f32 %v179_v21, %v1302_v0  ;;  %v194_v19 = vadd.f32 %v193_v3, %v1304_v1  ;;  %v199_v20 = vpop.f32.mrf.mxu0 }
 0x14d   :  { %606 = vmatmul.mubr.f32.vlgmr.msra.gmra.mxu1 %v490_v16  ;;  %v474_v38 = vsel %vm470_vm1, %v465_v28, %v421_v13  ;;  %v200_v27 = vadd.f32 %v199_v20, %v1304_v1 }
 0x14e   :  { %v210_v63 = vmax.f32 %v180_v36, 0.0 }
 0x14f   :  { %v445_v24 = vpop.permute.xlu0 %444  ;;  %v443_v25 = vpop.permute.xlu1 %442  ;;  %v217_v40 = vmax.f32 %v200_v27, 0.0 }
 0x150   :  { %v483_v42 = vsel %vm479_vm2, %v474_v38, %v445_v24 }
 0x151   :  { %v495_v49 = vmul.f32 %v483_v42, %v209_v37  ;;  %v494_v58 = vmul.f32 %v483_v42, %v208_v46  ;;  %v216_v37 = vmax.f32 %v198_v26, 0.0 }
 0x153   :  { %v419_v33 = vpop.permute.xlu0 %418  ;;  %v425_v35 = vpop.permute.xlu1 %424 }
 0x154   :  { %v473_v39 = vsel %vm470_vm1, %v464_v32, %v419_v33 }
 0x155   :  { %v482_v43 = vsel %vm479_vm2, %v473_v39, %v443_v25  ;;  %v215_v25 = vmax.f32 %v194_v19, 0.0 }
 0x156   :  { %v493_v34 = vmul.f32 %v482_v43, %v207_v30  ;;  %v492_v45 = vmul.f32 %v482_v43, %v206_v29  ;;  %v156_v29 = vadd.f32 %v1295_v55, %v1302_v0  ;;  %v158_v30 = vadd.f32 %v1297_v57, %v1304_v1 }
 0x157   :  { %v401_v47 = vpop.permute.xlu0 %400  ;;  %v399_v48 = vpop.permute.xlu1 %398 }
 0x158   :  { %610 = vmatprep.mubr.f32.mxu1 %v493_v34  ;;  %v467_v62 = vsel %vm229_vm0, %v1249_v41, %v401_v47  ;;  %v466_v5 = vsel %vm229_vm0, %v1255_v44, %v399_v48  ;;  %v192_v44 = vadd.f32 %v191_v56, %v1302_v0  ;;  %v202_v55 = vmax.f32 %v156_v29, 0.0 }
 0x159   :  { %611 = vmatmul.mubr.f32.gmra.mxu1 %v492_v45  ;;  %v476_v9 = vsel %vm470_vm1, %v467_v62, %v425_v35  ;;  %v203_v0 = vmax.f32 %v158_v30, 0.0 }
 0x15a   :  { %615 = vmatprep.mubr.f32.mxu1 %v495_v49  ;;  %v214_v24 = vmax.f32 %v192_v44, 0.0 }
 0x15b   :  { %v449_v59 = vpop.permute.xlu0 %448  ;;  %v447_v60 = vpop.permute.xlu1 %446 }
 0x15c   :  { %v485_v11 = vsel %vm479_vm2, %v476_v9, %v449_v59 }
 0x15d   :  { %616 = vmatmul.mubr.f32.gmra.mxu1 %v494_v58  ;;  %v499_v18 = vmul.f32 %v485_v11, %v213_v8  ;;  %v498_v21 = vmul.f32 %v485_v11, %v212_v15 }
 0x15f   :  { %v423_v6 = vpop.permute.xlu0 %422  ;;  %v405_v7 = vpop.permute.xlu1 %404 }
 0x160   :  { %v475_v10 = vsel %vm470_vm1, %v466_v5, %v423_v6  ;;  %v469_v42 = vsel %vm229_vm0, %v1265_v50, %v405_v7 }
 0x161   :  { %v484_v41 = vsel %vm479_vm2, %v475_v10, %v447_v60 }
 0x162   :  { %v497_v12 = vmul.f32 %v484_v41, %v211_v2  ;;  %v496_v13 = vmul.f32 %v484_v41, %v210_v63 }
 0x163   :  { %v403_v16 = vpop.permute.xlu1 %402  ;;  %v391_v17 = vpop.permute.xlu0 %390 }
 0x164   :  { %620 = vmatprep.mubr.f32.mxu1 %v497_v12  ;;  %v468_v28 = vsel %vm229_vm0, %v1271_v53, %v403_v16  ;;  %v462_v53 = vsel %vm229_vm0, %v1277_v54, %v391_v17 }
 0x165   :  { %621 = vmatmul.mubr.f32.gmra.mxu1 %v496_v13 }
 0x166   :  { %625 = vmatprep.mubr.f32.mxu1 %v499_v18 }
 0x167   :  { %v429_v22 = vpop.permute.xlu1 %428  ;;  %v427_v23 = vpop.permute.xlu0 %426 }
 0x168   :  { %v477_v31 = vsel %vm470_vm1, %v468_v28, %v427_v23  ;;  %v478_v57 = vsel %vm470_vm1, %v469_v42, %v429_v22 }
 0x169   :  { %626 = vmatmul.mubr.f32.gmra.mxu1 %v498_v21 }
 0x16b   :  { %v451_v32 = vpop.permute.xlu1 %450  ;;  %v415_v33 = vpop.permute.xlu0 %414 }
 0x16c   :  { %v486_v35 = vsel %vm479_vm2, %v477_v31, %v451_v32  ;;  %v471_v1 = vsel %vm470_vm1, %v462_v53, %v415_v33 }
 0x16d   :  { %v500_v38 = vmul.f32 %v486_v35, %v214_v24  ;;  %v501_v39 = vmul.f32 %v486_v35, %v215_v25 }
 0x16f   :  { %v453_v43 = vpop.permute.xlu1 %452  ;;  %v439_v34 = vpop.permute.xlu0 %438  ;;  %630 = vmatprep.mubr.f32.mxu1 %v501_v39 }
 0x170   :  { %v487_v45 = vsel %vm479_vm2, %v478_v57, %v453_v43  ;;  %v480_v46 = vsel %vm479_vm2, %v471_v1, %v439_v34  ;;  %631 = vmatmul.mubr.f32.gmra.mxu1 %v500_v38 }
 0x171   :  { %v502_v47 = vmul.f32 %v487_v45, %v216_v37  ;;  %v503_v48 = vmul.f32 %v487_v45, %v217_v40  ;;  %v488_v50 = vmul.f32 %v480_v46, %v202_v55  ;;  %v489_v49 = vmul.f32 %v480_v46, %v203_v0 }
 0x173   :  { %600 = vmatprep.mubr.f32.mxu0 %v489_v49  ;;  %635 = vmatprep.mubr.f32.mxu1 %v503_v48 }
 0x174   :  { %601 = vmatmul.mubr.f32.vlgmr.msra.gmra.mxu0 %v488_v50  ;;  %636 = vmatmul.mubr.f32.gmra.mxu1 %v502_v47 }
 0x20d   :  { %v799_v54 = vpop.f32.mrf.mxu1 }
 0x20f   :  { %v800_v51 = vpop.f32.mrf.mxu1 }
 0x210   :  { %v801_v36 = vadd.f32 %v800_v51, %v799_v54 }
 0x212   :  { %v645_v52 = vsel %vm641_vm3, %v801_v36, -inf }
 0x213   :  { %646 = vmax.xlane.f32.xlu1 %v645_v52 }
 0x219   :  { %v802_v56 = vpop.f32.mrf.mxu1 }
 0x21b   :  { %v803_v58 = vpop.f32.mrf.mxu1 }
 0x21c   :  { %v804_v41 = vadd.f32 %v803_v58, %v802_v56 }
 0x21d   :  { %v805_v59 = vpop.f32.mrf.mxu1 }
 0x21e   :  { %v648_v14 = vsel %vm641_vm3, %v804_v41, -inf }
 0x21f   :  { %v806_v60 = vpop.f32.mrf.mxu1 }
 0x220   :  { %v807_v13 = vadd.f32 %v806_v60, %v805_v59 }
 0x222   :  { %v651_v17 = vsel %vm641_vm3, %v807_v13, -inf }
 0x225   :  { %v808_v61 = vpop.f32.mrf.mxu1 }
 0x227   :  { %v809_v62 = vpop.f32.mrf.mxu1 }
 0x228   :  { %v810_v63 = vadd.f32 %v809_v62, %v808_v61 }
 0x229   :  { %v811_v2 = vpop.f32.mrf.mxu1 }
 0x22a   :  { %v654_v3 = vsel %vm641_vm3, %v810_v63, -inf }
 0x22b   :  { %655 = vmax.xlane.f32.xlu1 %v654_v3  ;;  %v812_v4 = vpop.f32.mrf.mxu1 }
 0x22c   :  { %v813_v16 = vadd.f32 %v812_v4, %v811_v2 }
 0x22e   :  { %v657_v19 = vsel %vm641_vm3, %v813_v16, -inf }
 0x230   :  { %v814_v5 = vpop.f32.mrf.mxu1 }
 0x232   :  { %v815_v6 = vpop.f32.mrf.mxu1 }
 0x233   :  { %v816_v7 = vadd.f32 %v815_v6, %v814_v5 }
 0x234   :  { %v796_v8 = vpop.f32.mrf.mxu0  ;;  %v817_v15 = vpop.f32.mrf.mxu1 }
 0x235   :  { %v660_v9 = vsel %vm641_vm3, %v816_v7, -inf }
 0x236   :  { %661 = vmax.xlane.f32.xlu1 %v660_v9  ;;  %v797_v10 = vpop.f32.mrf.mxu0  ;;  %v818_v18 = vpop.f32.mrf.mxu1 }
 0x237   :  { %v798_v11 = vadd.f32 %v797_v10, %v796_v8  ;;  %v819_v44 = vadd.f32 %v818_v18, %v817_v15 }
 0x239   :  { %v642_v12 = vsel %vm641_vm3, %v798_v11, -inf  ;;  %v663_v20 = vsel %vm641_vm3, %v819_v44, -inf }
 0x23a   :  { %643 = vmax.xlane.f32.xlu0 %v642_v12 }
 0x23e   :  { %649 = vmax.xlane.f32.xlu0 %v648_v14 }
 0x242   :  { %652 = vmax.xlane.f32.xlu0 %v651_v17 }
 0x246   :  { %658 = vmax.xlane.f32.xlu0 %v657_v19 }
 0x24a   :  { %664 = vmax.xlane.f32.xlu0 %v663_v20 }
 0x29c   :  { %v647_v21 = vpop.xlane.xlu1 %646 }
 0x29d   :  { %v667_v22 = vsub.f32 %v801_v36, %v647_v21 }
 0x29f   :  { %v676_v23 = vmul.f32 1.442695, %v667_v22 }
 0x2a1   :  { %876 = vpow2.f32 %v676_v23 }
 0x2ae   :  { %v877_v24 = vpop.eup %876 }
 0x2af   :  { %v693_v25 = vsel %vm641_vm3, %v877_v24, 0.0 }
 0x2b0   :  { %694 = vadd.xlane.f32.xlu0 %v693_v25 }
 0x2b4   :  { %v656_v26 = vpop.xlane.xlu1 %655 }
 0x2b5   :  { %v670_v29 = vsub.f32 %v810_v63, %v656_v26 }
 0x2b7   :  { %v682_v35 = vmul.f32 1.442695, %v670_v29 }
 0x2bf   :  { %v662_v31 = vpop.xlane.xlu1 %661 }
 0x2c0   :  { %v672_v37 = vsub.f32 %v816_v7, %v662_v31 }
 0x2c2   :  { %v686_v42 = vmul.f32 1.442695, %v672_v37 }
 0x2c3   :  { %v644_v27 = vpop.xlane.xlu0 %643 }
 0x2c4   :  { %v666_v28 = vsub.f32 %v798_v11, %v644_v27 }
 0x2c6   :  { %v674_v30 = vmul.f32 1.442695, %v666_v28 }
 0x2c7   :  { %v650_v32 = vpop.xlane.xlu0 %649 }
 0x2c8   :  { %878 = vpow2.f32 %v674_v30  ;;  %v668_v33 = vsub.f32 %v804_v41, %v650_v32 }
 0x2ca   :  { %v678_v38 = vmul.f32 1.442695, %v668_v33 }
 0x2cb   :  { %v653_v39 = vpop.xlane.xlu0 %652 }
 0x2cc   :  { %880 = vpow2.f32 %v678_v38  ;;  %v669_v40 = vsub.f32 %v807_v13, %v653_v39 }
 0x2cd   :  { %882 = vpow2.f32 %v682_v35 }
 0x2ce   :  { %v680_v53 = vmul.f32 1.442695, %v669_v40 }
 0x2cf   :  { %v659_v55 = vpop.xlane.xlu0 %658 }
 0x2d0   :  { %884 = vpow2.f32 %v680_v53  ;;  %v671_v0 = vsub.f32 %v813_v16, %v659_v55 }
 0x2d1   :  { %886 = vpow2.f32 %v686_v42 }
 0x2d2   :  { %v684_v57 = vmul.f32 1.442695, %v671_v0 }
 0x2d3   :  { %v665_v1 = vpop.xlane.xlu0 %664 }
 0x2d4   :  { %888 = vpow2.f32 %v684_v57  ;;  %v673_v43 = vsub.f32 %v819_v44, %v665_v1 }
 0x2d5   :  { %v879_v34 = vpop.eup %878 }
 0x2d6   :  { %v688_v45 = vmul.f32 1.442695, %v673_v43  ;;  %v690_v46 = vsel %vm641_vm3, %v879_v34, 0.0 }
 0x2d7   :  { %691 = vadd.xlane.f32.xlu1 %v690_v46 }
 0x2d8   :  { %890 = vpow2.f32 %v688_v45 }
 0x2d9   :  { %v881_v47 = vpop.eup %880 }
 0x2da   :  { %v696_v48 = vsel %vm641_vm3, %v881_v47, 0.0  ;;  %v883_v50 = vpop.eup %882 }
 0x2db   :  { %697 = vadd.xlane.f32.xlu1 %v696_v48  ;;  %v702_v54 = vsel %vm641_vm3, %v883_v50, 0.0 }
 0x2dd   :  { %v885_v49 = vpop.eup %884 }
 0x2de   :  { %v699_v51 = vsel %vm641_vm3, %v885_v49, 0.0  ;;  %v887_v36 = vpop.eup %886 }
 0x2df   :  { %703 = vadd.xlane.f32.xlu1 %v702_v54  ;;  %700 = vadd.xlane.f32.xlu0 %v699_v51  ;;  %v708_v56 = vsel %vm641_vm3, %v887_v36, 0.0 }
 0x2e1   :  { %v889_v52 = vpop.eup %888 }
 0x2e2   :  { %v705_v58 = vsel %vm641_vm3, %v889_v52, 0.0 }
 0x2e3   :  { %709 = vadd.xlane.f32.xlu1 %v708_v56  ;;  %706 = vadd.xlane.f32.xlu0 %v705_v58 }
 0x2e5   :  { %v891_v59 = vpop.eup %890 }
 0x2e6   :  { %v711_v60 = vsel %vm641_vm3, %v891_v59, 0.0 }
 0x2e7   :  { %712 = vadd.xlane.f32.xlu0 %v711_v60 }
 0x339   :  { %v695_v61 = vpop.xlane.xlu0 %694 }
 0x33a   :  { %892 = vrcp.f32 %v695_v61 }
 0x347   :  { %v893_v62 = vpop.eup %892 }
 0x348   :  { %v717_v63 = vmul.f32 %v893_v62, %v877_v24 }
 0x34a   :  { %731 = vst.msk [vmem:[%s1412_s8 + $0x8] sm:$0xff] %vm641_vm3, %v717_v63 }
 0x360   :  { %v692_v2 = vpop.xlane.xlu1 %691 }
 0x361   :  { %894 = vrcp.f32 %v692_v2 }
 0x364   :  { %v698_v3 = vpop.xlane.xlu1 %697 }
 0x365   :  { %896 = vrcp.f32 %v698_v3 }
 0x368   :  { %v704_v4 = vpop.xlane.xlu1 %703  ;;  %v701_v5 = vpop.xlane.xlu0 %700 }
 0x369   :  { %898 = vrcp.f32 %v704_v4 }
 0x36a   :  { %900 = vrcp.f32 %v701_v5 }
 0x36c   :  { %v710_v6 = vpop.xlane.xlu1 %709  ;;  %v707_v7 = vpop.xlane.xlu0 %706 }
 0x36d   :  { %902 = vrcp.f32 %v710_v6 }
 0x36e   :  { %v895_v8 = vpop.eup %894  ;;  %904 = vrcp.f32 %v707_v7 }
 0x36f   :  { %v715_v9 = vmul.f32 %v895_v8, %v879_v34 }
 0x370   :  { %v713_v10 = vpop.xlane.xlu0 %712 }
 0x371   :  { %730 = vst.msk [vmem:[%s1412_s8] sm:$0xff] %vm641_vm3, %v715_v9  ;;  %906 = vrcp.f32 %v713_v10 }
 0x372   :  { %v897_v11 = vpop.eup %896 }
 0x373   :  { %v719_v41 = vmul.f32 %v897_v11, %v881_v47 }
 0x375   :  { %732 = vst.msk [vmem:[%s1412_s8 + $0x10] sm:$0xff] %vm641_vm3, %v719_v41 }
 0x376   :  { %v899_v12 = vpop.eup %898 }
 0x377   :  { %v901_v13 = vpop.eup %900  ;;  %v723_v14 = vmul.f32 %v899_v12, %v883_v50 }
 0x378   :  { %v721_v15 = vmul.f32 %v901_v13, %v885_v49 }
 0x379   :  { %734 = vst.msk [vmem:[%s1412_s8 + $0x20] sm:$0xff] %vm641_vm3, %v723_v14 }
 0x37a   :  { %v903_v16 = vpop.eup %902  ;;  %733 = vst.msk [vmem:[%s1412_s8 + $0x18] sm:$0xff] %vm641_vm3, %v721_v15 }
 0x37b   :  { %v905_v17 = vpop.eup %904  ;;  %v727_v18 = vmul.f32 %v903_v16, %v887_v36 }
 0x37c   :  { %v725_v44 = vmul.f32 %v905_v17, %v889_v52 }
 0x37d   :  { %736 = vst.msk [vmem:[%s1412_s8 + $0x30] sm:$0xff] %vm641_vm3, %v727_v18 }
 0x37e   :  { %v907_v19 = vpop.eup %906  ;;  %735 = vst.msk [vmem:[%s1412_s8 + $0x28] sm:$0xff] %vm641_vm3, %v725_v44 }
 0x37f   :  { %v729_v20 = vmul.f32 %v907_v19, %v891_v59 }
 0x381   :  { %737 = vst.msk [vmem:[%s1412_s8 + $0x38] sm:$0xff] %vm641_vm3, %v729_v20 }

</bundles_post_ra>
